<compile_context>
chip_gen: v6e
topology: v6e:2x2x1
jax: 0.10.0
libtpu: 0.0.40
codegen_flags: <defaults>
</compile_context>

<pallas_src>
import jax
import jax.numpy as jnp
from jax.experimental import pallas as pl
from jax.experimental.pallas import tpu as pltpu

_LANE = 128
_SUBLANE = 8


def _round_up(n, m):
    return ((n + m - 1) // m) * m


def _tpu_vmem_capacity_bytes():
    """Physical VMEM per TensorCore; conservative fallback if the query fails."""
    try:
        info = pltpu.get_tpu_info()
        return int(getattr(info, "vmem_capacity_bytes", 64 << 20))
    except Exception:
        return 64 << 20  # v7x-sized conservative default


def _make_mlp_kernel(num_layers, operand_dtype):
    """Fused MLP body: all layers computed on one VMEM-resident batch tile."""

    def kernel(*refs):
        # refs = (x_ref, w1, b1, w2, b2, ..., wL, bL, o_ref)
        x_ref = refs[0]
        o_ref = refs[-1]
        param_refs = refs[1:-1]

        h = x_ref[...]  # already in operand dtype (cast done in wrapper)
        for i in range(num_layers):
            w_ref = param_refs[2 * i]
            b_ref = param_refs[2 * i + 1]
            acc = jnp.dot(h, w_ref[...], preferred_element_type=jnp.float32)
            acc = acc + b_ref[...].astype(jnp.float32)   # (1, out) broadcast
            if i < num_layers - 1:
                acc = jnp.tanh(acc)                      # EUP transcendental, f32
                h = acc.astype(operand_dtype)            # narrow for next MXU pass
            else:
                h = acc
        o_ref[...] = h.astype(o_ref.dtype)

    return kernel


def _pad_params(in_dim, weights, biases):
    """Zero-pad intermediate out-dims (and matching next in-dims) to 128 lanes.

    The LAST layer's out-dim is left unpadded so the kernel writes the true
    (M, out_dim) result directly (no wrapper un-pad / extra HBM round trip).
    Zero padding keeps the math exact: padded hidden columns are tanh(0)=0 and
    the corresponding weight rows of the next layer are 0.
    """
    num_layers = len(weights)
    padded_w, padded_b = [], []
    prev = in_dim
    for li, (w, b) in enumerate(zip(weights, biases)):
        k, n = w.shape
        n_pad = n if li == num_layers - 1 else _round_up(n, _LANE)
        wp = jnp.zeros((prev, n_pad), w.dtype).at[:k, :n].set(w)
        bp = jnp.zeros((1, n_pad), b.dtype).at[0, :n].set(b)
        padded_w.append(wp)
        padded_b.append(bp)
        prev = n_pad
    return padded_w, padded_b


def mlp_pallas(x, weights, biases, *, block_m=None, mxu_dtype=None,
               vmem_budget_bytes=None, min_grid_steps=4):
    """Run the fused MLP Pallas kernel.

    x:          (M, sizes[0])
    weights:    list of (sizes[i], sizes[i+1]) arrays
    biases:     list of (sizes[i+1],) arrays
    mxu_dtype:  optional narrower operand dtype for the MXU (e.g. jnp.bfloat16
                on v6e/v7x); accumulation stays f32. None -> native dtype.
    """
    num_layers = len(weights)
    M, in_dim = x.shape
    out_dim = weights[-1].shape[1]
    out_dtype = x.dtype

    operand_dtype = jnp.dtype(mxu_dtype) if mxu_dtype is not None else jnp.dtype(x.dtype)

    # Lane-dense intermediate parameter layout; final layer unpadded.
    pw, pb = _pad_params(in_dim, weights, biases)
    if operand_dtype != jnp.dtype(x.dtype):
        x = x.astype(operand_dtype)
        pw = [w.astype(operand_dtype) for w in pw]     # biases stay full precision

    # ---------- generation-aware VMEM budget / compiler limit ----------
    vmem_cap = _tpu_vmem_capacity_bytes()
    if vmem_budget_bytes is None:
        # v5e/v6e: 128 MiB physical -> generous budget; v7x: 64 MiB/TC -> tight.
        vmem_budget_bytes = (48 << 20) if vmem_cap >= (96 << 20) else (24 << 20)
    vmem_limit_bytes = int(min(vmem_budget_bytes + (8 << 20), vmem_cap - (4 << 20)))
    block_m_cap = 2048 if vmem_cap >= (96 << 20) else 1024

    op_itemsize = operand_dtype.itemsize
    out_itemsize = jnp.dtype(out_dtype).itemsize
    # Whole (padded) weight set is double-buffered alongside each grid step.
    param_bytes = 2 * sum(int(a.size) * a.dtype.itemsize for a in pw + pb)

    if block_m is None:
        max_width = max([in_dim] + [int(w.shape[1]) for w in pw])
        # Per-row VMEM: 2x x tile + 2x out tile (double-buffered DMAs) plus
        # live intermediates (~2 f32 temps + 1 operand-dtype temp at the
        # widest layer).
        per_row = (2 * in_dim * op_itemsize
                   + 2 * out_dim * out_itemsize
                   + (2 * 4 + op_itemsize) * max_width)
        mosaic_scratch = 2 << 20  # internal matmul / layout scratch headroom
        avail = max(vmem_budget_bytes - param_bytes - mosaic_scratch,
                    per_row * _SUBLANE)
        vmem_block_m = max(_SUBLANE, (avail // per_row) // _SUBLANE * _SUBLANE)
        # Keep >= min_grid_steps grid steps (so v7x's 2 TCs each pipeline >=2),
        # while amortizing the ~0.35us/step overhead with big tiles otherwise.
        steps_block_m = _round_up(pl.cdiv(M, max(1, min_grid_steps)), _SUBLANE)
        block_m = min(block_m_cap, vmem_block_m, steps_block_m,
                      _round_up(M, _SUBLANE))
        block_m = max(_SUBLANE, block_m)

    grid = (pl.cdiv(M, block_m),)

    in_specs = [pl.BlockSpec((block_m, in_dim), lambda i: (i, 0))]
    for w, b in zip(pw, pb):
        # Full-array blocks with constant index_map: fetched once, reused.
        in_specs.append(pl.BlockSpec(w.shape, lambda i: (0, 0)))
        in_specs.append(pl.BlockSpec(b.shape, lambda i: (0, 0)))
    # Unpadded output: last dim equals the full array dim (legal block shape).
    out_spec = pl.BlockSpec((block_m, out_dim), lambda i: (i, 0))

    # Advisory cost estimate so XLA schedules neighbours sensibly.
    flops = 2 * M * sum(int(w.shape[0]) * int(w.shape[1]) for w in pw)
    transcendentals = M * sum(int(w.shape[1]) for w in pw[:-1])
    bytes_accessed = (op_itemsize * M * in_dim + out_itemsize * M * out_dim
                      + sum(int(a.size) * a.dtype.itemsize for a in pw + pb))

    kernel = _make_mlp_kernel(num_layers, operand_dtype)

    call = pl.pallas_call(
        kernel,
        out_shape=jax.ShapeDtypeStruct((M, out_dim), out_dtype),
        grid_spec=pltpu.PrefetchScalarGridSpec(
            num_scalar_prefetch=0,
            grid=grid,
            in_specs=in_specs,
            out_specs=out_spec,
        ),
        compiler_params=pltpu.CompilerParams(
            dimension_semantics=("parallel",),
            vmem_limit_bytes=vmem_limit_bytes,
        ),
        cost_estimate=pl.CostEstimate(
            flops=flops,
            transcendentals=transcendentals,
            bytes_accessed=bytes_accessed,
        ),
    )

    args = [x]
    for w, b in zip(pw, pb):
        args.append(w)
        args.append(b)
    return call(*args)


def init_mlp_params(key, sizes, dtype=jnp.float32):
    """Deterministic init mimicking torch.nn.Linear's U(-1/sqrt(in), 1/sqrt(in))."""
    weights, biases = [], []
    for i in range(len(sizes) - 1):
        fan_in, fan_out = sizes[i], sizes[i + 1]
        key, kw, kb = jax.random.split(key, 3)
        bound = 1.0 / jnp.sqrt(fan_in)
        # Stored as (in, out): transpose of torch's (out, in) weight.
        w = jax.random.uniform(kw, (fan_in, fan_out), dtype, -bound, bound)
        b = jax.random.uniform(kb, (fan_out,), dtype, -bound, bound)
        weights.append(w)
        biases.append(b)
    return weights, biases


def mlp_reference(x, weights, biases):
    h = x.astype(jnp.float32)
    n = len(weights)
    for i, (w, b) in enumerate(zip(weights, biases)):
        h = h @ w.astype(jnp.float32) + b.astype(jnp.float32)
        if i < n - 1:
            h = jnp.tanh(h)
    return h.astype(x.dtype)


if __name__ == "__main__":
    key = jax.random.PRNGKey(0)

    # MLP(sizes=(32, 64, 48, 16)): Linear(32,64) -> Tanh -> Linear(64,48)
    #                              -> Tanh -> Linear(48,16)
    sizes = (32, 64, 48, 16)
    weights, biases = init_mlp_params(key, sizes)

    # Small case (single grid step).
    key, kx = jax.random.split(key)
    x_small = jax.random.normal(kx, (8, sizes[0]), jnp.float32)
    out_small = jax.block_until_ready(mlp_pallas(x_small, weights, biases))
    ref_small = mlp_reference(x_small, weights, biases)
    assert out_small.shape == (8, sizes[-1]), out_small.shape
    assert jnp.allclose(out_small, ref_small, atol=1e-5, rtol=1e-5), (
        float(jnp.max(jnp.abs(out_small - ref_small)))
    )

    # Larger case exercising batch tiling (grid > 1) and a masked tail block.
    key, kx2 = jax.random.split(key)
    x_big = jax.random.normal(kx2, (1000, sizes[0]), jnp.float32)
    out_big = jax.block_until_ready(mlp_pallas(x_big, weights, biases))
    ref_big = mlp_reference(x_big, weights, biases)
    assert out_big.shape == (1000, sizes[-1]), out_big.shape
    assert jnp.allclose(out_big, ref_big, atol=1e-5, rtol=1e-5), (
        float(jnp.max(jnp.abs(out_big - ref_big)))
    )

    # bf16-operand option (v6e/v7x MXU fast path): smoke test with loose tol.
    out_bf16 = jax.block_until_ready(
        mlp_pallas(x_small, weights, biases, mxu_dtype=jnp.bfloat16))
    assert out_bf16.shape == (8, sizes[-1])
    assert jnp.allclose(out_bf16, ref_small, atol=5e-2, rtol=5e-2)

    print("KERNEL_OK")
</pallas_src>

<mosaic_0001>
module attributes {stable_mosaic.version = 11 : i64} {
  func.func @kernel(%arg0: i32, %arg1: memref<8x32xf32, #tpu.memory_space<vmem>>, %arg2: memref<32x128xf32, #tpu.memory_space<vmem>>, %arg3: memref<1x128xf32, #tpu.memory_space<vmem>>, %arg4: memref<128x128xf32, #tpu.memory_space<vmem>>, %arg5: memref<1x128xf32, #tpu.memory_space<vmem>>, %arg6: memref<128x16xf32, #tpu.memory_space<vmem>>, %arg7: memref<1x16xf32, #tpu.memory_space<vmem>>, %arg8: memref<8x16xf32, #tpu.memory_space<vmem>>) attributes {dimension_semantics = [#tpu.dimension_semantics<parallel>], iteration_bounds = array<i64: 1>, scalar_prefetch = 0 : i64, scratch_operands = 0 : i64, tpu.core_type = #tpu.core_type<tc>, window_params = [{transform_indices = @transform_0, window_bounds = array<i64: 8, 32>}, {pipeline_mode = #tpu.pipeline_mode<synchronous>, transform_indices = @transform_1, window_bounds = array<i64: 32, 128>}, {pipeline_mode = #tpu.pipeline_mode<synchronous>, transform_indices = @transform_2, window_bounds = array<i64: 1, 128>}, {pipeline_mode = #tpu.pipeline_mode<synchronous>, transform_indices = @transform_3, window_bounds = array<i64: 128, 128>}, {pipeline_mode = #tpu.pipeline_mode<synchronous>, transform_indices = @transform_4, window_bounds = array<i64: 1, 128>}, {pipeline_mode = #tpu.pipeline_mode<synchronous>, transform_indices = @transform_5, window_bounds = array<i64: 128, 16>}, {pipeline_mode = #tpu.pipeline_mode<synchronous>, transform_indices = @transform_6, window_bounds = array<i64: 1, 16>}, {transform_indices = @transform_7, window_bounds = array<i64: 8, 16>}]} {
    %c0 = arith.constant 0 : index
    %c0_0 = arith.constant 0 : index
    %0 = vector.load %arg1[%c0, %c0_0] : memref<8x32xf32, #tpu.memory_space<vmem>>, vector<8x32xf32>
    %c0_1 = arith.constant 0 : index
    %c0_2 = arith.constant 0 : index
    %1 = vector.load %arg2[%c0_1, %c0_2] : memref<32x128xf32, #tpu.memory_space<vmem>>, vector<32x128xf32>
    %cst = arith.constant dense<0.000000e+00> : vector<8x128xf32>
    %2 = tpu.matmul %0, %1, %cst {dimension_numbers = #tpu.dot_dimension_numbers<[1], [0], [0], [1], [0, 0, 1, 1], [], []>} : vector<8x32xf32>, vector<32x128xf32>, vector<8x128xf32> -> vector<8x128xf32>
    %c0_3 = arith.constant 0 : index
    %c0_4 = arith.constant 0 : index
    %3 = vector.load %arg3[%c0_3, %c0_4] : memref<1x128xf32, #tpu.memory_space<vmem>>, vector<1x128xf32>
    %4 = vector.broadcast %3 : vector<1x128xf32> to vector<8x128xf32>
    %5 = arith.addf %2, %4 : vector<8x128xf32>
    %6 = math.tanh %5 : vector<8x128xf32>
    %c0_5 = arith.constant 0 : index
    %c0_6 = arith.constant 0 : index
    %7 = vector.load %arg4[%c0_5, %c0_6] : memref<128x128xf32, #tpu.memory_space<vmem>>, vector<128x128xf32>
    %cst_7 = arith.constant dense<0.000000e+00> : vector<8x128xf32>
    %8 = tpu.matmul %6, %7, %cst_7 {dimension_numbers = #tpu.dot_dimension_numbers<[1], [0], [0], [1], [0, 0, 1, 1], [], []>} : vector<8x128xf32>, vector<128x128xf32>, vector<8x128xf32> -> vector<8x128xf32>
    %c0_8 = arith.constant 0 : index
    %c0_9 = arith.constant 0 : index
    %9 = vector.load %arg5[%c0_8, %c0_9] : memref<1x128xf32, #tpu.memory_space<vmem>>, vector<1x128xf32>
    %10 = vector.broadcast %9 : vector<1x128xf32> to vector<8x128xf32>
    %11 = arith.addf %8, %10 : vector<8x128xf32>
    %12 = math.tanh %11 : vector<8x128xf32>
    %c0_10 = arith.constant 0 : index
    %c0_11 = arith.constant 0 : index
    %13 = vector.load %arg6[%c0_10, %c0_11] : memref<128x16xf32, #tpu.memory_space<vmem>>, vector<128x16xf32>
    %cst_12 = arith.constant dense<0.000000e+00> : vector<8x16xf32>
    %14 = tpu.matmul %12, %13, %cst_12 {dimension_numbers = #tpu.dot_dimension_numbers<[1], [0], [0], [1], [0, 0, 1, 1], [], []>} : vector<8x128xf32>, vector<128x16xf32>, vector<8x16xf32> -> vector<8x16xf32>
    %c0_13 = arith.constant 0 : index
    %c0_14 = arith.constant 0 : index
    %15 = vector.load %arg7[%c0_13, %c0_14] : memref<1x16xf32, #tpu.memory_space<vmem>>, vector<1x16xf32>
    %16 = vector.broadcast %15 : vector<1x16xf32> to vector<8x16xf32>
    %17 = arith.addf %14, %16 : vector<8x16xf32>
    %c0_15 = arith.constant 0 : index
    %c0_16 = arith.constant 0 : index
    %18 = vector.load %arg8[%c0_15, %c0_16] : memref<8x16xf32, #tpu.memory_space<vmem>>, vector<8x16xf32>
    tpu.vector_store %arg8[%c0_15, %c0_16], %17 {strides = array<i32>} : memref<8x16xf32, #tpu.memory_space<vmem>>, vector<8x16xf32>,
    return
  }
  func.func @transform_0(%arg0: i32) -> (i32, i32) {
    %c0_i32 = arith.constant 0 : i32
    %c0_i32_0 = arith.constant 0 : i32
    return %arg0, %c0_i32 : i32, i32
  }
  func.func @transform_1(%arg0: i32) -> (i32, i32) {
    %c0_i32 = arith.constant 0 : i32
    %c0_i32_0 = arith.constant 0 : i32
    %c0_i32_1 = arith.constant 0 : i32
    return %c0_i32, %c0_i32_0 : i32, i32
  }
  func.func @transform_2(%arg0: i32) -> (i32, i32) {
    %c0_i32 = arith.constant 0 : i32
    %c0_i32_0 = arith.constant 0 : i32
    %c0_i32_1 = arith.constant 0 : i32
    return %c0_i32, %c0_i32_0 : i32, i32
  }
  func.func @transform_3(%arg0: i32) -> (i32, i32) {
    %c0_i32 = arith.constant 0 : i32
    %c0_i32_0 = arith.constant 0 : i32
    %c0_i32_1 = arith.constant 0 : i32
    return %c0_i32, %c0_i32_0 : i32, i32
  }
  func.func @transform_4(%arg0: i32) -> (i32, i32) {
    %c0_i32 = arith.constant 0 : i32
    %c0_i32_0 = arith.constant 0 : i32
    %c0_i32_1 = arith.constant 0 : i32
    return %c0_i32, %c0_i32_0 : i32, i32
  }
  func.func @transform_5(%arg0: i32) -> (i32, i32) {
    %c0_i32 = arith.constant 0 : i32
    %c0_i32_0 = arith.constant 0 : i32
    %c0_i32_1 = arith.constant 0 : i32
    return %c0_i32, %c0_i32_0 : i32, i32
  }
  func.func @transform_6(%arg0: i32) -> (i32, i32) {
    %c0_i32 = arith.constant 0 : i32
    %c0_i32_0 = arith.constant 0 : i32
    %c0_i32_1 = arith.constant 0 : i32
    return %c0_i32, %c0_i32_0 : i32, i32
  }
  func.func @transform_7(%arg0: i32) -> (i32, i32) {
    %c0_i32 = arith.constant 0 : i32
    %c0_i32_0 = arith.constant 0 : i32
    return %arg0, %c0_i32 : i32, i32
  }
}

</mosaic_0001>

<bundles_post_ra>
// kernel: tpu_custom_call.1
= control target key start
LH: loop header
LB: loop body
LE: loop exit
PB: predicated region body
PF: predicated region fallthrough
CT: control target
= control target key end

     0   :  { %12 = vsyncpa [#allocation3], 0  ;;  %s712_s0 = inlined_call_operand.vmem [shape: f32[8,32], index: 0, kind: input, shape index: {}]   ;;  %s713_s1 = inlined_call_operand.hbm [shape: f32[32,128], index: 1, kind: input, shape index: {}]   ;;  %s714_s2 = inlined_call_operand.vmem [shape: f32[1,128], index: 2, kind: input, shape index: {}]   ;;  %s715_s3 = inlined_call_operand.vmem [shape: f32[128,128], index: 3, kind: input, shape index: {}]   ;;  %s716_s4 = inlined_call_operand.vmem [shape: f32[1,128], index: 4, kind: input, shape index: {}]   ;;  %s717_s5 = inlined_call_operand.vmem [shape: f32[128,16], index: 5, kind: input, shape index: {}]   ;;  %s718_s6 = inlined_call_operand.vmem [shape: f32[1,16], index: 6, kind: input, shape index: {}]   ;;  %s719_s7 = inlined_call_operand.hbm [shape: f32[8,16], index: 7, kind: output, shape index: {}]  }
   0x1   :  { %13 = vsyncpa [#allocation4], 0  ;;  %s510_s24 = smov [#allocation2]  }
   0x2   :  { %s21_s25 = sshll.u32 %s510_s24, 4  ;;  %s22_s25 = int_to_ptr.vmem [resolvable:$true] %s21_s25 }
   0x3   :  { %s474_s26 = scalar_lea.vmem %s22_s25, 512  ;;  %p479_p1 = scmp.lt.s32.totalorder %s22_s25, %s22_s25 }
   0x4   :  { %p475_p0 = scmp.ne.s32.totalorder %s22_s25, %s474_s26  ;;  %p480_p2 = scmp.lt.s32.totalorder %s474_s26, %s474_s26 }
   0x6   :  { %p481_p3 = por %p480_p2, %p479_p1 }
   0x8   :  { %p482_p4 = pnand %p481_p3, %p475_p0 }
   0xa   :  { %485 = shalt.err (!%p482_p4)
}
   0xb   :  { %s511_s27 = smov 128   ;;  %s512_s28 = smov 8  }
   0xc   :  { %27 = dma.hbm_to_vmem [thread:$0]  %s713_s1, 512, %s22_s25, [#allocation3], %s511_s27, %s511_s27, %s512_s28  }
   0xd   :  { %506 = dma.done.wait [#allocation3], 512  }
   0xe   :  { %507 = vsyncadd [#allocation3], 4294966784  ;;  %v513_v0 = vmov 0.0   ;;  %vm514_vm0 = vmmov 0   ;;  %v45_v1 = vld [vmem:[#allocation2 + $0x18] sm:$0xff]  ;;  %v44_v2 = vld [vmem:[#allocation2 + $0x10] sm:$0xff] }
   0xf   :  { %375 = vmatprep.subr.mxu0 %v513_v0  ;;  %383 = vmatprep.mubr.msk.f32.mxu0 %vm514_vm0, %v513_v0  ;;  %v143_v3 = vld [vmem:[%s715_s3 + $0x78] sm:$0xff]  ;;  %v43_v4 = vld [vmem:[#allocation2 + $0x8] sm:$0xff]  ;;  %v142_v5 = vld [vmem:[%s715_s3 + $0x70] sm:$0xff]  ;;  %vm53_vm1 = vcmask 261120   ;;  %s515_s25 = smov [#allocation5]   ;;  %vm315_vm2 = vcmask 130048  }
  0x10   :  { %386 = vmatprep.subr.mxu1 %v513_v0  ;;  %418 = vmatprep.mubr.msk.f32.mxu1 %vm514_vm0, %v513_v0  ;;  %v141_v6 = vld [vmem:[%s715_s3 + $0x68] sm:$0xff]  ;;  %v42_v7 = vld [vmem:[#allocation2] sm:$0xff]  ;;  %v139_v10 = vld [vmem:[%s715_s3 + $0x58] sm:$0xff] }
  0x11   :  { %376 = vmatpush3.msra.mxu0 %v45_v1  ;;  %387 = vmatpush3.msra.mxu1 %v143_v3  ;;  %v41_v8 = vld [vmem:[%s712_s0] sm:$0xff]  ;;  %v138_v11 = vld [vmem:[%s715_s3 + $0x50] sm:$0xff]  ;;  %v137_v12 = vld [vmem:[%s715_s3 + $0x48] sm:$0xff] }
  0x12   :  { %377 = vmatprep.subr.mxu0 %v513_v0  ;;  %388 = vmatprep.subr.mxu1 %v513_v0  ;;  %v140_v9 = vld [vmem:[%s715_s3 + $0x60] sm:$0xff]  ;;  %v135_v14 = vld [vmem:[%s715_s3 + $0x38] sm:$0xff]  ;;  %v134_v15 = vld [vmem:[%s715_s3 + $0x30] sm:$0xff] }
  0x13   :  { %378 = vmatpush3.msra.mxu0 %v44_v2  ;;  %389 = vmatpush3.msra.mxu1 %v142_v5  ;;  %v136_v13 = vld [vmem:[%s715_s3 + $0x40] sm:$0xff]  ;;  %v133_v16 = vld [vmem:[%s715_s3 + $0x28] sm:$0xff]  ;;  %v131_v18 = vld [vmem:[%s715_s3 + $0x18] sm:$0xff] }
  0x14   :  { %379 = vmatprep.subr.mxu0 %v513_v0  ;;  %390 = vmatprep.subr.mxu1 %v513_v0  ;;  %v132_v17 = vld [vmem:[%s715_s3 + $0x20] sm:$0xff]  ;;  %v130_v19 = vld [vmem:[%s715_s3 + $0x10] sm:$0xff]  ;;  %v129_v20 = vld [vmem:[%s715_s3 + $0x8] sm:$0xff] }
  0x15   :  { %380 = vmatpush3.msra.mxu0 %v43_v4  ;;  %391 = vmatpush3.msra.mxu1 %v141_v6  ;;  %v128_v21 = vld [vmem:[%s715_s3] sm:$0xff]  ;;  %v237_v22 = vld [vmem:[%s717_s5 + $0x78] sm:$0xff]  ;;  %v236_v23 = vld [vmem:[%s717_s5 + $0x70] sm:$0xff] }
  0x16   :  { %381 = vmatprep.subr.mxu0 %v513_v0  ;;  %392 = vmatprep.subr.mxu1 %v513_v0  ;;  %v235_v24 = vld [vmem:[%s717_s5 + $0x68] sm:$0xff]  ;;  %v234_v25 = vld [vmem:[%s717_s5 + $0x60] sm:$0xff]  ;;  %v233_v26 = vld [vmem:[%s717_s5 + $0x58] sm:$0xff] }
  0x17   :  { %382 = vmatpush3.msra.mxu0 %v42_v7  ;;  %393 = vmatpush3.msra.mxu1 %v140_v9  ;;  %v232_v27 = vld [vmem:[%s717_s5 + $0x50] sm:$0xff]  ;;  %v231_v28 = vld [vmem:[%s717_s5 + $0x48] sm:$0xff]  ;;  %v332_v29 = vld [vmem:[%s714_s2] ss:$0 sm:$0xff] }
  0x18   :  { %384 = vmatmul.mubr.msk.f32.vlgmr.msra.gmra.mxu0 %vm53_vm1, %v41_v8  ;;  %394 = vmatprep.subr.mxu1 %v513_v0  ;;  %v230_v34 = vld [vmem:[%s717_s5 + $0x40] sm:$0xff]  ;;  %v229_v35 = vld [vmem:[%s717_s5 + $0x38] sm:$0xff]  ;;  %v228_v36 = vld [vmem:[%s717_s5 + $0x30] sm:$0xff] }
  0x19   :  { %421 = vmatprep.subr.mxu0 %v513_v0  ;;  %395 = vmatpush3.msra.mxu1 %v139_v10  ;;  %v227_v37 = vld [vmem:[%s717_s5 + $0x28] sm:$0xff]  ;;  %v226_v38 = vld [vmem:[%s717_s5 + $0x20] sm:$0xff]  ;;  %v225_v39 = vld [vmem:[%s717_s5 + $0x18] sm:$0xff] }
  0x1a   :  { %453 = vmatprep.mubr.msk.f32.mxu0 %vm514_vm0, %v513_v0  ;;  %396 = vmatprep.subr.mxu1 %v513_v0  ;;  %v224_v40 = vld [vmem:[%s717_s5 + $0x10] sm:$0xff]  ;;  %v223_v41 = vld [vmem:[%s717_s5 + $0x8] sm:$0xff]  ;;  %v222_v42 = vld [vmem:[%s717_s5] sm:$0xff]  ;;  %s323_s5 = sshll.u32 %s515_s25, 4  ;;  %s324_s5 = int_to_ptr.vmem [resolvable:$true] %s323_s5 }
  0x1b   :  { %397 = vmatpush3.msra.mxu1 %v138_v11  ;;  %422 = vmatpush3.msra.mxu0 %v237_v22  ;;  %v334_v43 = vld [vmem:[%s716_s4] ss:$0 sm:$0xff]  ;;  %s486_s26 = scalar_lea.vmem %s324_s5, 128  ;;  %p491_p6 = scmp.lt.s32.totalorder %s324_s5, %s324_s5 }
  0x1c   :  { %398 = vmatprep.subr.mxu1 %v513_v0  ;;  %423 = vmatprep.subr.mxu0 %v513_v0  ;;  %v335_v48 = vld [vmem:[%s718_s6] ss:$0 sm:$0xff]  ;;  %p487_p5 = scmp.ne.s32.totalorder %s324_s5, %s486_s26  ;;  %p492_p7 = scmp.lt.s32.totalorder %s486_s26, %s486_s26 }
  0x1d   :  { %399 = vmatpush3.msra.mxu1 %v137_v12  ;;  %424 = vmatpush3.msra.mxu0 %v236_v23 }
  0x1e   :  { %400 = vmatprep.subr.mxu1 %v513_v0  ;;  %425 = vmatprep.subr.mxu0 %v513_v0  ;;  %p493_p8 = por %p492_p7, %p491_p6 }
  0x1f   :  { %401 = vmatpush3.msra.mxu1 %v136_v13  ;;  %426 = vmatpush3.msra.mxu0 %v235_v24 }
  0x20   :  { %402 = vmatprep.subr.mxu1 %v513_v0  ;;  %427 = vmatprep.subr.mxu0 %v513_v0  ;;  %p494_p9 = pnand %p493_p8, %p487_p5 }
  0x21   :  { %403 = vmatpush3.msra.mxu1 %v135_v14  ;;  %428 = vmatpush3.msra.mxu0 %v234_v25 }
  0x22   :  { %404 = vmatprep.subr.mxu1 %v513_v0  ;;  %429 = vmatprep.subr.mxu0 %v513_v0 }
  0x23   :  { %405 = vmatpush3.msra.mxu1 %v134_v15  ;;  %430 = vmatpush3.msra.mxu0 %v233_v26 }
  0x24   :  { %406 = vmatprep.subr.mxu1 %v513_v0  ;;  %431 = vmatprep.subr.mxu0 %v513_v0 }
  0x25   :  { %407 = vmatpush3.msra.mxu1 %v133_v16  ;;  %432 = vmatpush3.msra.mxu0 %v232_v27 }
  0x26   :  { %408 = vmatprep.subr.mxu1 %v513_v0  ;;  %433 = vmatprep.subr.mxu0 %v513_v0 }
  0x27   :  { %409 = vmatpush3.msra.mxu1 %v132_v17  ;;  %434 = vmatpush3.msra.mxu0 %v231_v28 }
  0x28   :  { %410 = vmatprep.subr.mxu1 %v513_v0  ;;  %435 = vmatprep.subr.mxu0 %v513_v0 }
  0x29   :  { %411 = vmatpush3.msra.mxu1 %v131_v18  ;;  %436 = vmatpush3.msra.mxu0 %v230_v34 }
  0x2a   :  { %412 = vmatprep.subr.mxu1 %v513_v0  ;;  %437 = vmatprep.subr.mxu0 %v513_v0 }
  0x2b   :  { %413 = vmatpush3.msra.mxu1 %v130_v19  ;;  %438 = vmatpush3.msra.mxu0 %v229_v35 }
  0x2c   :  { %414 = vmatprep.subr.mxu1 %v513_v0  ;;  %439 = vmatprep.subr.mxu0 %v513_v0 }
  0x2d   :  { %415 = vmatpush3.msra.mxu1 %v129_v20  ;;  %440 = vmatpush3.msra.mxu0 %v228_v36 }
  0x2e   :  { %416 = vmatprep.subr.mxu1 %v513_v0  ;;  %441 = vmatprep.subr.mxu0 %v513_v0 }
  0x2f   :  { %417 = vmatpush3.msra.mxu1 %v128_v21  ;;  %442 = vmatpush3.msra.mxu0 %v227_v37 }
  0x30   :  { %443 = vmatprep.subr.mxu0 %v513_v0 }
  0x31   :  { %444 = vmatpush3.msra.mxu0 %v226_v38 }
  0x32   :  { %445 = vmatprep.subr.mxu0 %v513_v0 }
  0x33   :  { %446 = vmatpush3.msra.mxu0 %v225_v39 }
  0x34   :  { %447 = vmatprep.subr.mxu0 %v513_v0 }
  0x35   :  { %448 = vmatpush3.msra.mxu0 %v224_v40 }
  0x36   :  { %449 = vmatprep.subr.mxu0 %v513_v0 }
  0x37   :  { %450 = vmatpush3.msra.mxu0 %v223_v41 }
  0x38   :  { %451 = vmatprep.subr.mxu0 %v513_v0 }
  0x39   :  { %452 = vmatpush3.msra.mxu0 %v222_v42 }
  0xd8   :  { %v123_v30 = vpop.f32.mrf.mxu0 }
  0xd9   :  { %v124_v31 = vadd.f32 %v332_v29, %v123_v30 }
  0xda   :  { %v385_v32 = vpop.f32.mrf.mxu0 }
  0xdb   :  { %462 = vtanh.f32 %v124_v31 }
  0xe8   :  { %v463_v33 = vpop.eup %462 }
  0xe9   :  { %419 = vmatmul.mubr.f32.vlgmr.msra.gmra.mxu1 %v463_v33 }
 0x1a9   :  { %v217_v44 = vpop.f32.mrf.mxu1 }
 0x1aa   :  { %v218_v45 = vadd.f32 %v334_v43, %v217_v44 }
 0x1ab   :  { %v420_v46 = vpop.f32.mrf.mxu1 }
 0x1ac   :  { %464 = vtanh.f32 %v218_v45 }
 0x1b9   :  { %v465_v47 = vpop.eup %464 }
 0x1ba   :  { %454 = vmatmul.mubr.f32.vlgmr.msra.gmra.mxu0 %v465_v47 }
 0x27a   :  { %v311_v49 = vpop.f32.mrf.mxu0 }
 0x27b   :  { %v312_v50 = vadd.f32 %v335_v48, %v311_v49 }
 0x27c   :  { %v455_v51 = vpop.f32.mrf.mxu0 }
 0x27d   :  { %316 = vst.msk [vmem:[#allocation5] sm:$0xff] %vm315_vm2, %v312_v50 }
 0x27e   :  { %497 = shalt.err (!%p494_p9)
}
 0x27f   :  { %326 = dma.vmem_to_hbm [thread:$0]  %s324_s5, 128, %s719_s7, [#allocation4]  }
 0x280   :  { %508 = dma.done.wait [#allocation4], 128  }
 0x281   :  { %509 = vsyncadd [#allocation4], 4294967168 }
 0x282   :  { %330 = vsyncpa [#allocation3], 1 }
 0x283   :  { %331 = vsyncpa [#allocation4], 1 }

</bundles_post_ra>
